<compile_context>
chip_gen: v5e
topology: v5e:2x2
jax: 0.10.0
libtpu: 0.0.40
codegen_flags: <defaults>
</compile_context>

<pallas_src>
import functools

import jax
import jax.numpy as jnp
from jax.experimental import pallas as pl
from jax.experimental.pallas import tpu as pltpu


def _round_up(x, m):
    return ((x + m - 1) // m) * m


def _cdiv(a, b):
    return (a + b - 1) // b


def _mlp_kernel(x_ref, wt_ref, b_ref, o_ref):
    # x: (TILE_N, D_pad) compute_dtype, wt: (D_pad, C_pad) compute_dtype,
    # b: (1, C_pad) f32, o: (TILE_N, C_pad) f32.
    # Linear: x @ W^T + b (weight pre-transposed in the wrapper); bf16 operands
    # accumulate in f32 on the MXU.
    logits = jnp.dot(x_ref[...], wt_ref[...],
                     preferred_element_type=jnp.float32) + b_ref[...]
    # Numerically stable log_softmax over the class dim (dim=1), all in f32.
    m = jnp.max(logits, axis=1, keepdims=True)
    shifted = logits - m
    lse = jnp.log(jnp.sum(jnp.exp(shifted), axis=1, keepdims=True))
    o_ref[...] = (shifted - lse).astype(o_ref.dtype)


def prepare_mlp_params(w, b, *, compute_dtype=jnp.bfloat16):
    """Transpose + pad the Linear params once (hoist out of the per-call path).

    w: (C, D) torch.nn.Linear layout, b: (C,).
    Returns (w_t, b_p): (D_pad, C_pad) compute_dtype, (1, C_pad) f32.
    """
    C, D = w.shape
    d_pad = _round_up(D, 128)
    c_pad = _round_up(C, 128)
    w_t = jnp.transpose(w).astype(compute_dtype)
    if (d_pad, c_pad) != (D, C):
        w_t = jnp.pad(w_t, ((0, d_pad - D), (0, c_pad - C)))
    b_p = b.astype(jnp.float32)
    if c_pad != C:
        # Padded classes get a huge negative f32 bias -> exp() underflows to 0.
        b_p = jnp.concatenate(
            [b_p, jnp.full((c_pad - C,), -1e30, dtype=jnp.float32)])
    return w_t, b_p.reshape(1, c_pad)


def _choose_tile_n(N, *, tile_n_max=512, target_steps=8, min_tile=128):
    """Batch tile: multiple of 8, <= padded batch; prefer >= target_steps grid
    steps (pipelining / v7x megacore) with >= min_tile rows each, and an even
    step count when there is more than one step."""
    n_rows = _round_up(max(N, 1), 8)
    tile = min(_round_up(tile_n_max, 8), n_rows)
    if n_rows >= target_steps * min_tile:
        tile = min(tile, _round_up(_cdiv(n_rows, target_steps), 8))
    tile = max(tile, min(min_tile, n_rows))
    steps = _cdiv(n_rows, tile)
    if steps > 1 and steps % 2 == 1:
        tile = _round_up(_cdiv(n_rows, steps + 1), 8)
    return tile


def mlp_forward_prepared(x, w_t, b_p, num_classes, *,
                         compute_dtype=jnp.bfloat16, tile_n=512):
    """x: (N, D); w_t: (D_pad, C_pad) prepared; b_p: (1, C_pad) f32."""
    N, D = x.shape
    d_pad, c_pad = w_t.shape

    tile_n = _choose_tile_n(N, tile_n_max=tile_n)
    n_pad = _round_up(N, tile_n)

    x_p = x.astype(compute_dtype)
    if (n_pad, d_pad) != (N, D):
        # Only pay the extra pass over x when the shape actually needs padding.
        x_p = jnp.pad(x_p, ((0, n_pad - N), (0, d_pad - D)))

    grid = (n_pad // tile_n,)

    in_itemsize = jnp.dtype(compute_dtype).itemsize
    # VMEM plan: single-buffered resident weight/bias + double-buffered tiles.
    required = (d_pad * c_pad * in_itemsize            # weight (Buffered(1))
                + c_pad * 4                            # bias   (Buffered(1))
                + 2 * tile_n * d_pad * in_itemsize     # x tile, double-buffered
                + 2 * tile_n * c_pad * 4)              # out tile, double-buffered
    try:
        phys_vmem = pltpu.get_tpu_info().vmem_capacity_bytes
    except Exception:
        phys_vmem = 64 << 20   # conservative: v7x per-TensorCore VMEM
    vmem_cap = int(phys_vmem * 0.625)   # headroom for compiler-internal scratch
    vmem_limit = min(max(2 * required + (4 << 20), 16 << 20), vmem_cap)
    if required + (2 << 20) > vmem_limit:
        # TODO(synk): add a class/feature-tiled (online-logsumexp) fallback for
        # weights that do not fit resident in VMEM.
        raise ValueError(
            f"MLP weight too large for resident-weight kernel: need ~{required} "
            f"bytes of VMEM but only {vmem_limit} bytes budgeted.")

    out = pl.pallas_call(
        _mlp_kernel,
        out_shape=jax.ShapeDtypeStruct((n_pad, c_pad), jnp.float32),
        grid_spec=pl.GridSpec(
            grid=grid,
            in_specs=[
                # x: tiled over the batch, double-buffered by default.
                pl.BlockSpec((tile_n, d_pad), lambda i: (i, 0)),
                # Weight / bias: constant index_map -> resident in VMEM across
                # the whole grid; single-buffer so no wasted second copy.
                pl.BlockSpec((d_pad, c_pad), lambda i: (0, 0),
                             pipeline_mode=pl.Buffered(1)),
                pl.BlockSpec((1, c_pad), lambda i: (0, 0),
                             pipeline_mode=pl.Buffered(1)),
            ],
            out_specs=pl.BlockSpec((tile_n, c_pad), lambda i: (i, 0)),
        ),
        compiler_params=pltpu.CompilerParams(
            dimension_semantics=("parallel",),
            vmem_limit_bytes=int(vmem_limit),
        ),
    )(x_p, w_t, b_p)

    if (n_pad, c_pad) != (N, num_classes):
        out = out[:N, :num_classes]
    return out


def mlp_forward(x, w, b, *, compute_dtype=jnp.bfloat16, tile_n=512):
    """Full MLP forward: x (N, D) f32, w (C, D) torch layout, b (C,) -> (N, C) f32.

    For repeated calls with static params, call prepare_mlp_params once and use
    mlp_forward_prepared to skip the per-call transpose/pad passes over w.
    """
    C = w.shape[0]
    w_t, b_p = prepare_mlp_params(w, b, compute_dtype=compute_dtype)
    return mlp_forward_prepared(x, w_t, b_p, C,
                                compute_dtype=compute_dtype, tile_n=tile_n)


if __name__ == "__main__":
    key = jax.random.PRNGKey(0)
    k_x, k_w, k_x2, k_w2 = jax.random.split(key, 4)

    # Small shapes consistent with MLP(input_dim, output_dim).
    N, D, C = 8, 32, 16  # batch, input_dim, output_dim
    x = jax.random.normal(k_x, (N, D), dtype=jnp.float32)
    # Deterministic init matching the torch module: weight ~ N(0, 0.01), bias = 0.
    w = 0.01 * jax.random.normal(k_w, (C, D), dtype=jnp.float32)
    b = jnp.zeros((C,), dtype=jnp.float32)

    fwd_bf16 = jax.jit(functools.partial(mlp_forward, compute_dtype=jnp.bfloat16))
    fwd_f32 = jax.jit(functools.partial(mlp_forward, compute_dtype=jnp.float32))

    out_bf16 = jax.block_until_ready(fwd_bf16(x, w, b))
    out_f32 = jax.block_until_ready(fwd_f32(x, w, b))

    # References (same math as the torch module).
    hi = jax.lax.Precision.HIGHEST
    ref_f32 = jax.nn.log_softmax(jnp.dot(x, w.T, precision=hi) + b, axis=1)
    xb = x.astype(jnp.bfloat16).astype(jnp.float32)
    wb = w.astype(jnp.bfloat16).astype(jnp.float32)
    ref_bf16 = jax.nn.log_softmax(jnp.dot(xb, wb.T, precision=hi) + b, axis=1)

    assert out_f32.shape == (N, C), f"bad output shape {out_f32.shape}"
    assert jnp.allclose(out_f32, ref_f32, atol=2e-5, rtol=2e-5), "f32 mismatch"
    assert jnp.allclose(out_bf16, ref_bf16, atol=2e-5, rtol=2e-5), "bf16 mismatch"
    # bf16-operand output vs pure-f32 reference: loose sanity check only.
    assert jnp.allclose(out_bf16, ref_f32, atol=5e-2, rtol=5e-2), "bf16 sanity"

    # Non-aligned shapes to exercise the padding / slicing paths.
    N2, D2, C2 = 10, 40, 7
    x2 = jax.random.normal(k_x2, (N2, D2), dtype=jnp.float32)
    w2 = 0.01 * jax.random.normal(k_w2, (C2, D2), dtype=jnp.float32)
    b2 = jnp.zeros((C2,), dtype=jnp.float32)
    out2 = jax.block_until_ready(fwd_f32(x2, w2, b2))
    ref2 = jax.nn.log_softmax(jnp.dot(x2, w2.T, precision=hi) + b2, axis=1)
    assert out2.shape == (N2, C2), f"bad output shape {out2.shape}"
    assert jnp.allclose(out2, ref2, atol=2e-5, rtol=2e-5), "padded-shape mismatch"

    print("KERNEL_OK")
</pallas_src>

<mosaic_0001>
module attributes {stable_mosaic.version = 11 : i64} {
  func.func @_mlp_kernel(%arg0: i32, %arg1: memref<8x128xbf16, #tpu.memory_space<vmem>>, %arg2: memref<128x128xbf16, #tpu.memory_space<vmem>>, %arg3: memref<1x128xf32, #tpu.memory_space<vmem>>, %arg4: memref<8x128xf32, #tpu.memory_space<vmem>>) attributes {dimension_semantics = [#tpu.dimension_semantics<parallel>], iteration_bounds = array<i64: 1>, scalar_prefetch = 0 : i64, scratch_operands = 0 : i64, tpu.core_type = #tpu.core_type<tc>, window_params = [{transform_indices = @transform_0, window_bounds = array<i64: 8, 128>}, {pipeline_mode = #tpu.pipeline_mode<synchronous>, transform_indices = @transform_1, window_bounds = array<i64: 128, 128>}, {pipeline_mode = #tpu.pipeline_mode<synchronous>, transform_indices = @transform_2, window_bounds = array<i64: 1, 128>}, {transform_indices = @transform_3, window_bounds = array<i64: 8, 128>}]} {
    %c0 = arith.constant 0 : index
    %c0_0 = arith.constant 0 : index
    %0 = vector.load %arg1[%c0, %c0_0] : memref<8x128xbf16, #tpu.memory_space<vmem>>, vector<8x128xbf16>
    %c0_1 = arith.constant 0 : index
    %c0_2 = arith.constant 0 : index
    %1 = vector.load %arg2[%c0_1, %c0_2] : memref<128x128xbf16, #tpu.memory_space<vmem>>, vector<128x128xbf16>
    %cst = arith.constant dense<0.000000e+00> : vector<8x128xf32>
    %2 = tpu.matmul %0, %1, %cst {dimension_numbers = #tpu.dot_dimension_numbers<[1], [0], [0], [1], [0, 0, 1, 1], [], []>} : vector<8x128xbf16>, vector<128x128xbf16>, vector<8x128xf32> -> vector<8x128xf32>
    %c0_3 = arith.constant 0 : index
    %c0_4 = arith.constant 0 : index
    %3 = vector.load %arg3[%c0_3, %c0_4] : memref<1x128xf32, #tpu.memory_space<vmem>>, vector<1x128xf32>
    %4 = vector.broadcast %3 : vector<1x128xf32> to vector<8x128xf32>
    %5 = arith.addf %2, %4 : vector<8x128xf32>
    %cst_5 = arith.constant dense<0xFF800000> : vector<8xf32>
    %6 = vector.multi_reduction <maximumf>, %5, %cst_5 [1] : vector<8x128xf32> to vector<8xf32>
    %7 = vector.shape_cast %6 : vector<8xf32> to vector<8x1xf32>
    %8 = vector.broadcast %7 : vector<8x1xf32> to vector<8x128xf32>
    %9 = arith.subf %5, %8 : vector<8x128xf32>
    %10 = math.exp %9 : vector<8x128xf32>
    %cst_6 = arith.constant dense<0.000000e+00> : vector<8xf32>
    %11 = vector.multi_reduction <add>, %10, %cst_6 [1] : vector<8x128xf32> to vector<8xf32>
    %12 = vector.shape_cast %11 : vector<8xf32> to vector<8x1xf32>
    %13 = math.log %12 : vector<8x1xf32>
    %14 = vector.broadcast %13 : vector<8x1xf32> to vector<8x128xf32>
    %15 = arith.subf %9, %14 : vector<8x128xf32>
    %c0_7 = arith.constant 0 : index
    %c0_8 = arith.constant 0 : index
    %16 = vector.load %arg4[%c0_7, %c0_8] : memref<8x128xf32, #tpu.memory_space<vmem>>, vector<8x128xf32>
    tpu.vector_store %arg4[%c0_7, %c0_8], %15 {strides = array<i32>} : memref<8x128xf32, #tpu.memory_space<vmem>>, vector<8x128xf32>,
    return
  }
  func.func @transform_0(%arg0: i32) -> (i32, i32) {
    %c0_i32 = arith.constant 0 : i32
    %c0_i32_0 = arith.constant 0 : i32
    return %arg0, %c0_i32 : i32, i32
  }
  func.func @transform_1(%arg0: i32) -> (i32, i32) {
    %c0_i32 = arith.constant 0 : i32
    %c0_i32_0 = arith.constant 0 : i32
    %c0_i32_1 = arith.constant 0 : i32
    return %c0_i32, %c0_i32_0 : i32, i32
  }
  func.func @transform_2(%arg0: i32) -> (i32, i32) {
    %c0_i32 = arith.constant 0 : i32
    %c0_i32_0 = arith.constant 0 : i32
    %c0_i32_1 = arith.constant 0 : i32
    return %c0_i32, %c0_i32_0 : i32, i32
  }
  func.func @transform_3(%arg0: i32) -> (i32, i32) {
    %c0_i32 = arith.constant 0 : i32
    %c0_i32_0 = arith.constant 0 : i32
    return %arg0, %c0_i32 : i32, i32
  }
}

</mosaic_0001>

<bundles_post_ra>
// kernel: mlp_forward.1
= control target key start
LH: loop header
LB: loop body
LE: loop exit
PB: predicated region body
PF: predicated region fallthrough
CT: control target
= control target key end

     0   :  { %s250_s0 = inlined_call_operand.vmem [shape: bf16[8,128], index: 0, kind: input, shape index: {}]   ;;  %s251_s1 = inlined_call_operand.vmem [shape: bf16[128,128], index: 1, kind: input, shape index: {}]   ;;  %s252_s2 = inlined_call_operand.vmem [shape: f32[1,128], index: 2, kind: input, shape index: {}]   ;;  %s253_s3 = inlined_call_operand.hbm [shape: f32[8,128], index: 3, kind: output, shape index: {}]  }
   0x1   :  { %v163_v0 = vld [vmem:[%s251_s1 + $0x38] sm:$0xff]  ;;  %v162_v1 = vld [vmem:[%s251_s1 + $0x30] sm:$0xff] }
   0x2   :  { %84 = vmatpush.bf16.msra.mxu0 %v163_v0 }
   0x3   :  { %8 = vsyncpa [#allocation3], 0  ;;  %v161_v2 = vld [vmem:[%s251_s1 + $0x28] sm:$0xff]  ;;  %v160_v3 = vld [vmem:[%s251_s1 + $0x20] sm:$0xff]  ;;  %s115_s7 = sshll.u32 %s253_s3, 4  ;;  %s116_s7 = int_to_ptr.hbm [resolvable:$true] %s115_s7 }
   0x4   :  { %v159_v4 = vld [vmem:[%s251_s1 + $0x18] sm:$0xff]  ;;  %v158_v5 = vld [vmem:[%s251_s1 + $0x10] sm:$0xff]  ;;  %v157_v6 = vld [vmem:[%s251_s1 + $0x8] sm:$0xff] }
   0x5   :  { %v156_v7 = vld [vmem:[%s251_s1] sm:$0xff]  ;;  %s196_s1 = smov [#allocation2]  }
   0x6   :  { %85 = vmatpush.bf16.msra.mxu0 %v162_v1  ;;  %v15_v8 = vld [vmem:[%s250_s0] sm:$0xf]  ;;  %s113_s0 = sshll.u32 %s196_s1, 4  ;;  %s114_s0 = int_to_ptr.vmem [resolvable:$true] %s113_s0 }
   0x7   :  { %v165_v9 = vld [vmem:[%s252_s2] ss:$0 sm:$0xff] }
   0xa   :  { %86 = vmatpush.bf16.msra.mxu0 %v161_v2 }
   0xe   :  { %87 = vmatpush.bf16.msra.mxu0 %v160_v3 }
  0x12   :  { %88 = vmatpush.bf16.msra.mxu0 %v159_v4 }
  0x16   :  { %89 = vmatpush.bf16.msra.mxu0 %v158_v5 }
  0x1a   :  { %90 = vmatpush.bf16.msra.mxu0 %v157_v6 }
  0x1e   :  { %91 = vmatpush.bf16.msra.mxu0 %v156_v7 }
  0x21   :  { %92 = vmatmul.bf16.vlgmr.msra.gmra.mxu0 %v15_v8 }
  0x9e   :  { %v93_v10 = vpop.f32.mrf.mxu0 }
  0x9f   :  { %v94_v11 = vadd.f32 %v165_v9, %v93_v10 }
  0xa1   :  { %97 = vmax.xlane.f32.xlu0 %v94_v11 }
  0xa6   :  { %v95_v12 = vpop.f32.mrf.mxu0 }
 0x114   :  { %v98_v13 = vpop.xlane.xlu0 %97 }
 0x115   :  { %v99_v14 = vsub.f32 %v94_v11, %v98_v13 }
 0x117   :  { %v100_v15 = vmul.f32 1.442695, %v99_v14 }
 0x119   :  { %166 = vpow2.f32 %v100_v15 }
 0x11f   :  { %v167_v16 = vpop.eup %166 }
 0x120   :  { %102 = vadd.xlane.f32.xlu0 %v167_v16 }
 0x193   :  { %v103_v17 = vpop.xlane.xlu0 %102 }
 0x194   :  { %168 = vlog2.f32 %v103_v17 }
 0x19a   :  { %v169_v18 = vpop.eup %168 }
 0x19b   :  { %v105_v19 = vmul.f32 0.6931472, %v169_v18 }
 0x19d   :  { %v106_v20 = vsub.f32 %v99_v14, %v105_v19 }
 0x19f   :  { %107 = vst [vmem:[#allocation2] sm:$0xff] %v106_v20 }
 0x1a0   :  { %118 = dma.vmem_to_hbm [thread:$0]  %s114_s0, 128, %s116_s7, [#allocation3]  }
 0x1a1   :  { %194 = dma.done.wait [#allocation3], 128  }
 0x1a2   :  { %195 = vsyncadd [#allocation3], 4294967168 }
 0x1a3   :  { %123 = vsyncpa [#allocation3], 1 }

</bundles_post_ra>
